<compile_context>
chip_gen: v5e
topology: v5e:2x2
jax: 0.10.0
libtpu: 0.0.40
codegen_flags: <defaults>
</compile_context>

<pallas_src>
import math
from functools import partial, reduce

import jax
import jax.numpy as jnp
from jax.experimental import pallas as pl
from jax.experimental.pallas import tpu as pltpu


def _round_up(x, m):
    return ((x + m - 1) // m) * m


def _mlp_kernel(x_ref, w1_ref, b1_ref, w2_ref, b2_ref, w3_ref, b3_ref, o_ref,
                *, compute_dtype):
    # fc1: Linear + ReLU (f32 accumulation on the MXU regardless of compute dtype)
    h1 = jnp.dot(x_ref[...].astype(compute_dtype),
                 w1_ref[...].astype(compute_dtype),
                 preferred_element_type=jnp.float32)
    h1 = jnp.maximum(h1 + b1_ref[...], 0.0)
    # fc2: Linear + ReLU
    h2 = jnp.dot(h1.astype(compute_dtype),
                 w2_ref[...].astype(compute_dtype),
                 preferred_element_type=jnp.float32)
    h2 = jnp.maximum(h2 + b2_ref[...], 0.0)
    # fc3: Linear (no activation)
    out = jnp.dot(h2.astype(compute_dtype),
                  w3_ref[...].astype(compute_dtype),
                  preferred_element_type=jnp.float32)
    o_ref[...] = (out + b3_ref[...]).astype(o_ref.dtype)


def _xla_forward(x, params):
    h1 = jnp.maximum(x @ params["w1"] + params["b1"], 0.0)
    h2 = jnp.maximum(h1 @ params["w2"] + params["b2"], 0.0)
    return h2 @ params["w3"] + params["b3"]


def vanilla_mlp_forward(x, params, *, compute_dtype=jnp.float32,
                        tb_max=512, min_pallas_batch=0):
    """x: (B, input_size) float32. params: dict of transposed weights / biases.

    compute_dtype: dtype fed to the MXU (f32 default; bf16 halves matmul cost /
                   activation bytes but changes numerics slightly).
    tb_max:        batch tile cap (512 sits near the HBM roofline; VMEM headroom
                   allows up to ~2-4K even on v7x's 64 MiB/TC).
    min_pallas_batch: optional escape hatch -- batches smaller than this are
                   dispatched to plain XLA (weight DMA + launch overhead dominate
                   a Pallas call at tiny B). Default 0 => always use the kernel.
    """
    w1, b1 = params["w1"], params["b1"]
    w2, b2 = params["w2"], params["b2"]
    w3, b3 = params["w3"], params["b3"]

    B, in_size = x.shape
    hidden = w1.shape[1]          # 128
    out_size = w3.shape[1]

    if B < min_pallas_batch:
        return _xla_forward(x, params)

    # ---- batch tiling ----
    # B <= tb_max: single block equal to the full array (no padding, no masking).
    # B  > tb_max: TB = tb_max (multiple of 8); ragged last block handled by Pallas.
    TB = B if B <= tb_max else tb_max
    grid = (pl.cdiv(B, TB),)

    # Weights/biases stay VMEM-resident: same (zero) block index at every step.
    def resident(arr):
        ndim = arr.ndim
        return pl.BlockSpec(arr.shape, lambda i, _n=ndim: (0,) * _n)

    # v7x: shard the batch axis across the two TensorCores.
    try:
        kind = jax.devices()[0].device_kind.lower()
    except Exception:  # pragma: no cover
        kind = ""
    if grid[0] > 1 and ("v7" in kind or "tpu7" in kind):
        dim_sem = (pltpu.CORE_PARALLEL,)
    else:
        dim_sem = ("parallel",)

    itemsize = jnp.dtype(x.dtype).itemsize
    flops = 2 * B * (in_size * hidden + hidden * hidden + hidden * out_size)
    bytes_accessed = itemsize * (
        B * in_size + B * out_size
        + in_size * hidden + hidden * hidden + hidden * out_size
        + 2 * hidden + out_size
    )

    return pl.pallas_call(
        partial(_mlp_kernel, compute_dtype=compute_dtype),
        out_shape=jax.ShapeDtypeStruct((B, out_size), x.dtype),
        grid=grid,
        in_specs=[
            pl.BlockSpec((TB, in_size), lambda i: (i, 0)),
            resident(w1), resident(b1),
            resident(w2), resident(b2),
            resident(w3), resident(b3),
        ],
        out_specs=pl.BlockSpec((TB, out_size), lambda i: (i, 0)),
        compiler_params=pltpu.CompilerParams(dimension_semantics=dim_sem),
        cost_estimate=pl.CostEstimate(
            flops=flops, transcendentals=0, bytes_accessed=bytes_accessed),
    )(x, w1, b1, w2, b2, w3, b3)


def init_vanilla_mlp(key, input_shape, output_shape):
    """Deterministic init mimicking nn.Linear default (uniform +/-1/sqrt(fan_in)).
    Weights are stored already transposed: (in_features, out_features)."""
    input_size = reduce(lambda a, b: a * b, input_shape)
    output_size = reduce(lambda a, b: a * b, output_shape)
    dims = [(input_size, 128), (128, 128), (128, output_size)]
    params = {}
    keys = jax.random.split(key, 2 * len(dims))
    for idx, (fan_in, fan_out) in enumerate(dims):
        bound = 1.0 / math.sqrt(fan_in)
        w = jax.random.uniform(keys[2 * idx], (fan_in, fan_out),
                               minval=-bound, maxval=bound, dtype=jnp.float32)
        b = jax.random.uniform(keys[2 * idx + 1], (1, fan_out),
                               minval=-bound, maxval=bound, dtype=jnp.float32)
        params[f"w{idx + 1}"] = w
        params[f"b{idx + 1}"] = b
    return params


if __name__ == "__main__":
    key = jax.random.PRNGKey(0)
    k_param, k_x1, k_x2 = jax.random.split(key, 3)

    # input_shape=(4, 16) -> input_size=64, output_shape=(10,) -> output_size=10
    input_shape = (4, 16)
    output_shape = (10,)
    input_size = reduce(lambda a, b: a * b, input_shape)
    output_size = reduce(lambda a, b: a * b, output_shape)

    params = init_vanilla_mlp(k_param, input_shape, output_shape)

    # Case 1: small batch through the Pallas path (single full-array block).
    batch = 8
    x = jax.random.normal(k_x1, (batch, input_size), dtype=jnp.float32)
    out = jax.block_until_ready(vanilla_mlp_forward(x, params))
    ref = _xla_forward(x, params)
    assert out.shape == (batch, output_size)
    assert jnp.allclose(out, ref, atol=1e-5, rtol=1e-5)

    # Case 2: larger batch, grid of 3 with a ragged last block (1200 = 2*512 + 176).
    batch2 = 1200
    x2 = jax.random.normal(k_x2, (batch2, input_size), dtype=jnp.float32)
    out2 = jax.block_until_ready(vanilla_mlp_forward(x2, params))
    ref2 = _xla_forward(x2, params)
    assert out2.shape == (batch2, output_size)
    assert jnp.allclose(out2, ref2, atol=1e-5, rtol=1e-5)

    # Case 3: optional bf16 compute path (f32 accumulation) -- looser tolerance.
    out3 = jax.block_until_ready(
        vanilla_mlp_forward(x2, params, compute_dtype=jnp.bfloat16))
    assert jnp.allclose(out3, ref2, atol=5e-2, rtol=5e-2)

    # Case 4: small-batch XLA escape hatch (no Pallas call for B < threshold).
    out4 = jax.block_until_ready(
        vanilla_mlp_forward(x, params, min_pallas_batch=256))
    assert jnp.allclose(out4, ref, atol=1e-5, rtol=1e-5)

    print("KERNEL_OK")
</pallas_src>

<mosaic_0001>
module attributes {stable_mosaic.version = 11 : i64} {
  func.func @_mlp_kernel(%arg0: i32, %arg1: memref<8x64xf32, #tpu.memory_space<vmem>>, %arg2: memref<64x128xf32, #tpu.memory_space<vmem>>, %arg3: memref<1x128xf32, #tpu.memory_space<vmem>>, %arg4: memref<128x128xf32, #tpu.memory_space<vmem>>, %arg5: memref<1x128xf32, #tpu.memory_space<vmem>>, %arg6: memref<128x10xf32, #tpu.memory_space<vmem>>, %arg7: memref<1x10xf32, #tpu.memory_space<vmem>>, %arg8: memref<8x10xf32, #tpu.memory_space<vmem>>) attributes {dimension_semantics = [#tpu.dimension_semantics<parallel>], iteration_bounds = array<i64: 1>, scalar_prefetch = 0 : i64, scratch_operands = 0 : i64, tpu.core_type = #tpu.core_type<tc>, window_params = [{transform_indices = @transform_0, window_bounds = array<i64: 8, 64>}, {pipeline_mode = #tpu.pipeline_mode<synchronous>, transform_indices = @transform_1, window_bounds = array<i64: 64, 128>}, {pipeline_mode = #tpu.pipeline_mode<synchronous>, transform_indices = @transform_2, window_bounds = array<i64: 1, 128>}, {pipeline_mode = #tpu.pipeline_mode<synchronous>, transform_indices = @transform_3, window_bounds = array<i64: 128, 128>}, {pipeline_mode = #tpu.pipeline_mode<synchronous>, transform_indices = @transform_4, window_bounds = array<i64: 1, 128>}, {pipeline_mode = #tpu.pipeline_mode<synchronous>, transform_indices = @transform_5, window_bounds = array<i64: 128, 10>}, {pipeline_mode = #tpu.pipeline_mode<synchronous>, transform_indices = @transform_6, window_bounds = array<i64: 1, 10>}, {transform_indices = @transform_7, window_bounds = array<i64: 8, 10>}]} {
    %c0 = arith.constant 0 : index
    %c0_0 = arith.constant 0 : index
    %0 = vector.load %arg1[%c0, %c0_0] : memref<8x64xf32, #tpu.memory_space<vmem>>, vector<8x64xf32>
    %c0_1 = arith.constant 0 : index
    %c0_2 = arith.constant 0 : index
    %1 = vector.load %arg2[%c0_1, %c0_2] : memref<64x128xf32, #tpu.memory_space<vmem>>, vector<64x128xf32>
    %cst = arith.constant dense<0.000000e+00> : vector<8x128xf32>
    %2 = tpu.matmul %0, %1, %cst {dimension_numbers = #tpu.dot_dimension_numbers<[1], [0], [0], [1], [0, 0, 1, 1], [], []>} : vector<8x64xf32>, vector<64x128xf32>, vector<8x128xf32> -> vector<8x128xf32>
    %c0_3 = arith.constant 0 : index
    %c0_4 = arith.constant 0 : index
    %3 = vector.load %arg3[%c0_3, %c0_4] : memref<1x128xf32, #tpu.memory_space<vmem>>, vector<1x128xf32>
    %4 = vector.broadcast %3 : vector<1x128xf32> to vector<8x128xf32>
    %5 = arith.addf %2, %4 : vector<8x128xf32>
    %cst_5 = arith.constant 0.000000e+00 : f32
    %6 = vector.broadcast %cst_5 : f32 to vector<8x128xf32>
    %7 = arith.maximumf %5, %6 : vector<8x128xf32>
    %c0_6 = arith.constant 0 : index
    %c0_7 = arith.constant 0 : index
    %8 = vector.load %arg4[%c0_6, %c0_7] : memref<128x128xf32, #tpu.memory_space<vmem>>, vector<128x128xf32>
    %cst_8 = arith.constant dense<0.000000e+00> : vector<8x128xf32>
    %9 = tpu.matmul %7, %8, %cst_8 {dimension_numbers = #tpu.dot_dimension_numbers<[1], [0], [0], [1], [0, 0, 1, 1], [], []>} : vector<8x128xf32>, vector<128x128xf32>, vector<8x128xf32> -> vector<8x128xf32>
    %c0_9 = arith.constant 0 : index
    %c0_10 = arith.constant 0 : index
    %10 = vector.load %arg5[%c0_9, %c0_10] : memref<1x128xf32, #tpu.memory_space<vmem>>, vector<1x128xf32>
    %11 = vector.broadcast %10 : vector<1x128xf32> to vector<8x128xf32>
    %12 = arith.addf %9, %11 : vector<8x128xf32>
    %cst_11 = arith.constant 0.000000e+00 : f32
    %13 = vector.broadcast %cst_11 : f32 to vector<8x128xf32>
    %14 = arith.maximumf %12, %13 : vector<8x128xf32>
    %c0_12 = arith.constant 0 : index
    %c0_13 = arith.constant 0 : index
    %15 = vector.load %arg6[%c0_12, %c0_13] : memref<128x10xf32, #tpu.memory_space<vmem>>, vector<128x10xf32>
    %cst_14 = arith.constant dense<0.000000e+00> : vector<8x10xf32>
    %16 = tpu.matmul %14, %15, %cst_14 {dimension_numbers = #tpu.dot_dimension_numbers<[1], [0], [0], [1], [0, 0, 1, 1], [], []>} : vector<8x128xf32>, vector<128x10xf32>, vector<8x10xf32> -> vector<8x10xf32>
    %c0_15 = arith.constant 0 : index
    %c0_16 = arith.constant 0 : index
    %17 = vector.load %arg7[%c0_15, %c0_16] : memref<1x10xf32, #tpu.memory_space<vmem>>, vector<1x10xf32>
    %18 = vector.broadcast %17 : vector<1x10xf32> to vector<8x10xf32>
    %19 = arith.addf %16, %18 : vector<8x10xf32>
    %c0_17 = arith.constant 0 : index
    %c0_18 = arith.constant 0 : index
    %20 = vector.load %arg8[%c0_17, %c0_18] : memref<8x10xf32, #tpu.memory_space<vmem>>, vector<8x10xf32>
    tpu.vector_store %arg8[%c0_17, %c0_18], %19 {strides = array<i32>} : memref<8x10xf32, #tpu.memory_space<vmem>>, vector<8x10xf32>,
    return
  }
  func.func @transform_0(%arg0: i32) -> (i32, i32) {
    %c0_i32 = arith.constant 0 : i32
    %c0_i32_0 = arith.constant 0 : i32
    return %arg0, %c0_i32 : i32, i32
  }
  func.func @transform_1(%arg0: i32) -> (i32, i32) {
    %c0_i32 = arith.constant 0 : i32
    %c0_i32_0 = arith.constant 0 : i32
    %c0_i32_1 = arith.constant 0 : i32
    return %c0_i32, %c0_i32_0 : i32, i32
  }
  func.func @transform_2(%arg0: i32) -> (i32, i32) {
    %c0_i32 = arith.constant 0 : i32
    %c0_i32_0 = arith.constant 0 : i32
    %c0_i32_1 = arith.constant 0 : i32
    return %c0_i32, %c0_i32_0 : i32, i32
  }
  func.func @transform_3(%arg0: i32) -> (i32, i32) {
    %c0_i32 = arith.constant 0 : i32
    %c0_i32_0 = arith.constant 0 : i32
    %c0_i32_1 = arith.constant 0 : i32
    return %c0_i32, %c0_i32_0 : i32, i32
  }
  func.func @transform_4(%arg0: i32) -> (i32, i32) {
    %c0_i32 = arith.constant 0 : i32
    %c0_i32_0 = arith.constant 0 : i32
    %c0_i32_1 = arith.constant 0 : i32
    return %c0_i32, %c0_i32_0 : i32, i32
  }
  func.func @transform_5(%arg0: i32) -> (i32, i32) {
    %c0_i32 = arith.constant 0 : i32
    %c0_i32_0 = arith.constant 0 : i32
    %c0_i32_1 = arith.constant 0 : i32
    return %c0_i32, %c0_i32_0 : i32, i32
  }
  func.func @transform_6(%arg0: i32) -> (i32, i32) {
    %c0_i32 = arith.constant 0 : i32
    %c0_i32_0 = arith.constant 0 : i32
    %c0_i32_1 = arith.constant 0 : i32
    return %c0_i32, %c0_i32_0 : i32, i32
  }
  func.func @transform_7(%arg0: i32) -> (i32, i32) {
    %c0_i32 = arith.constant 0 : i32
    %c0_i32_0 = arith.constant 0 : i32
    return %arg0, %c0_i32 : i32, i32
  }
}

</mosaic_0001>

<bundles_post_ra>
// kernel: tpu_custom_call.1
= control target key start
LH: loop header
LB: loop body
LE: loop exit
PB: predicated region body
PF: predicated region fallthrough
CT: control target
= control target key end

     0   :  { %12 = vsyncpa [#allocation3], 0  ;;  %s399_s0 = inlined_call_operand.vmem [shape: f32[8,64], index: 0, kind: input, shape index: {}]   ;;  %s400_s1 = inlined_call_operand.hbm [shape: f32[64,128], index: 1, kind: input, shape index: {}]   ;;  %s401_s2 = inlined_call_operand.vmem [shape: f32[1,128], index: 2, kind: input, shape index: {}]   ;;  %s402_s3 = inlined_call_operand.vmem [shape: f32[128,128], index: 3, kind: input, shape index: {}]   ;;  %s403_s4 = inlined_call_operand.vmem [shape: f32[1,128], index: 4, kind: input, shape index: {}]   ;;  %s404_s5 = inlined_call_operand.vmem [shape: f32[128,10], index: 5, kind: input, shape index: {}]   ;;  %s405_s6 = inlined_call_operand.vmem [shape: f32[1,10], index: 6, kind: input, shape index: {}]   ;;  %s406_s7 = inlined_call_operand.hbm [shape: f32[8,10], index: 7, kind: output, shape index: {}]  }
   0x1   :  { %13 = vsyncpa [#allocation4], 0  ;;  %s20_s26 = sshll.u32 %s400_s1, 4  ;;  %s241_s27 = smov [#allocation2]   ;;  %s21_s26 = int_to_ptr.hbm [resolvable:$true] %s20_s26 }
   0x2   :  { %s22_s28 = sshll.u32 %s241_s27, 4  ;;  %s242_s29 = smov 128   ;;  %s23_s28 = int_to_ptr.vmem [resolvable:$true] %s22_s28 }
   0x3   :  { %s243_s30 = smov 8  }
   0x4   :  { %28 = dma.hbm_to_vmem [thread:$0]  %s21_s26, 1024, %s23_s28, [#allocation3], %s242_s29, %s242_s29, %s243_s30  }
   0x5   :  { %237 = dma.done.wait [#allocation3], 1024  }
   0x6   :  { %238 = vsyncadd [#allocation3], 4294966272  ;;  %v51_v0 = vld [vmem:[#allocation2 + $0x38] sm:$0xff]  ;;  %v50_v1 = vld [vmem:[#allocation2 + $0x30] sm:$0xff]  ;;  %vm56_vm0 = vcmask 523264   ;;  %s244_s26 = smov [#allocation5]  }
   0x7   :  { %68 = vmatpush.msra.mxu0 %v51_v0  ;;  %v49_v2 = vld [vmem:[#allocation2 + $0x28] sm:$0xff]  ;;  %v96_v3 = vld [vmem:[%s402_s3 + $0x78] sm:$0xff]  ;;  %v95_v4 = vld [vmem:[%s402_s3 + $0x70] sm:$0xff]  ;;  %s169_s27 = sshll.u32 %s244_s26, 4  ;;  %s171_s29 = sshll.u32 %s406_s7, 4  ;;  %vm162_vm1 = vcmask 80896   ;;  %s170_s27 = int_to_ptr.vmem [resolvable:$true] %s169_s27  ;;  %s172_s29 = int_to_ptr.hbm [resolvable:$true] %s171_s29 }
   0x8   :  { %v48_v5 = vld [vmem:[#allocation2 + $0x20] sm:$0xff]  ;;  %101 = vmatpush.msra.mxu1 %v96_v3  ;;  %v94_v6 = vld [vmem:[%s402_s3 + $0x68] sm:$0xff]  ;;  %v47_v7 = vld [vmem:[#allocation2 + $0x18] sm:$0xff] }
   0x9   :  { %69 = vmatpush.msra.mxu0 %v50_v1  ;;  %v93_v8 = vld [vmem:[%s402_s3 + $0x60] sm:$0xff]  ;;  %v46_v9 = vld [vmem:[#allocation2 + $0x10] sm:$0xff]  ;;  %v92_v10 = vld [vmem:[%s402_s3 + $0x58] sm:$0xff] }
   0xa   :  { %102 = vmatpush.msra.mxu1 %v95_v4  ;;  %v45_v11 = vld [vmem:[#allocation2 + $0x8] sm:$0xff]  ;;  %v91_v12 = vld [vmem:[%s402_s3 + $0x50] sm:$0xff]  ;;  %v44_v13 = vld [vmem:[#allocation2] sm:$0xff] }
   0xb   :  { %70 = vmatpush.msra.mxu0 %v49_v2  ;;  %v43_v14 = vld [vmem:[%s399_s0] sm:$0xff]  ;;  %v90_v15 = vld [vmem:[%s402_s3 + $0x48] sm:$0xff]  ;;  %v88_v17 = vld [vmem:[%s402_s3 + $0x38] sm:$0xff] }
   0xc   :  { %103 = vmatpush.msra.mxu1 %v94_v6  ;;  %v89_v16 = vld [vmem:[%s402_s3 + $0x40] sm:$0xff]  ;;  %v87_v18 = vld [vmem:[%s402_s3 + $0x30] sm:$0xff]  ;;  %v86_v19 = vld [vmem:[%s402_s3 + $0x28] sm:$0xff] }
   0xd   :  { %71 = vmatpush.msra.mxu0 %v48_v5  ;;  %v85_v20 = vld [vmem:[%s402_s3 + $0x20] sm:$0xff]  ;;  %v84_v21 = vld [vmem:[%s402_s3 + $0x18] sm:$0xff]  ;;  %v83_v22 = vld [vmem:[%s402_s3 + $0x10] sm:$0xff] }
   0xe   :  { %104 = vmatpush.msra.mxu1 %v93_v8  ;;  %v82_v23 = vld [vmem:[%s402_s3 + $0x8] sm:$0xff]  ;;  %v81_v24 = vld [vmem:[%s402_s3] sm:$0xff]  ;;  %v137_v25 = vld [vmem:[%s404_s5 + $0x78] sm:$0xff] }
   0xf   :  { %72 = vmatpush.msra.mxu0 %v47_v7  ;;  %v136_v26 = vld [vmem:[%s404_s5 + $0x70] sm:$0xff]  ;;  %142 = vmatpush.msra.mxu2 %v137_v25  ;;  %v135_v27 = vld [vmem:[%s404_s5 + $0x68] sm:$0xff]  ;;  %v134_v28 = vld [vmem:[%s404_s5 + $0x60] sm:$0xff] }
  0x10   :  { %105 = vmatpush.msra.mxu1 %v92_v10  ;;  %v133_v29 = vld [vmem:[%s404_s5 + $0x58] sm:$0xff]  ;;  %v132_v30 = vld [vmem:[%s404_s5 + $0x50] sm:$0xff]  ;;  %v131_v31 = vld [vmem:[%s404_s5 + $0x48] sm:$0xff] }
  0x11   :  { %73 = vmatpush.msra.mxu0 %v46_v9  ;;  %143 = vmatpush.msra.mxu2 %v136_v26  ;;  %v130_v32 = vld [vmem:[%s404_s5 + $0x40] sm:$0xff]  ;;  %v129_v33 = vld [vmem:[%s404_s5 + $0x38] sm:$0xff]  ;;  %v128_v34 = vld [vmem:[%s404_s5 + $0x30] sm:$0xff] }
  0x12   :  { %106 = vmatpush.msra.mxu1 %v91_v12  ;;  %v127_v35 = vld [vmem:[%s404_s5 + $0x28] sm:$0xff]  ;;  %v126_v36 = vld [vmem:[%s404_s5 + $0x20] sm:$0xff]  ;;  %v125_v37 = vld [vmem:[%s404_s5 + $0x18] sm:$0xff] }
  0x13   :  { %74 = vmatpush.msra.mxu0 %v45_v11  ;;  %144 = vmatpush.msra.mxu2 %v135_v27  ;;  %v186_v38 = vld [vmem:[%s401_s2] ss:$0 sm:$0xff]  ;;  %v124_v42 = vld [vmem:[%s404_s5 + $0x10] sm:$0xff]  ;;  %v123_v43 = vld [vmem:[%s404_s5 + $0x8] sm:$0xff] }
  0x14   :  { %107 = vmatpush.msra.mxu1 %v90_v15  ;;  %v122_v44 = vld [vmem:[%s404_s5] sm:$0xff] }
  0x15   :  { %75 = vmatpush.msra.mxu0 %v44_v13  ;;  %145 = vmatpush.msra.mxu2 %v134_v28  ;;  %v187_v45 = vld [vmem:[%s403_s4] ss:$0 sm:$0xff] }
  0x16   :  { %181 = vmatmul.msk.f32.vlgmr.msra.gmra.mxu0 %vm56_vm0, %v43_v14  ;;  %108 = vmatpush.msra.mxu1 %v89_v16  ;;  %v188_v49 = vld [vmem:[%s405_s6] ss:$0 sm:$0xff] }
  0x17   :  { %146 = vmatpush.msra.mxu2 %v133_v29 }
  0x18   :  { %109 = vmatpush.msra.mxu1 %v88_v17 }
  0x19   :  { %147 = vmatpush.msra.mxu2 %v132_v30 }
  0x1a   :  { %110 = vmatpush.msra.mxu1 %v87_v18 }
  0x1b   :  { %148 = vmatpush.msra.mxu2 %v131_v31 }
  0x1c   :  { %111 = vmatpush.msra.mxu1 %v86_v19 }
  0x1d   :  { %149 = vmatpush.msra.mxu2 %v130_v32 }
  0x1e   :  { %112 = vmatpush.msra.mxu1 %v85_v20 }
  0x1f   :  { %150 = vmatpush.msra.mxu2 %v129_v33 }
  0x20   :  { %113 = vmatpush.msra.mxu1 %v84_v21 }
  0x21   :  { %151 = vmatpush.msra.mxu2 %v128_v34 }
  0x22   :  { %114 = vmatpush.msra.mxu1 %v83_v22 }
  0x23   :  { %152 = vmatpush.msra.mxu2 %v127_v35 }
  0x24   :  { %115 = vmatpush.msra.mxu1 %v82_v23 }
  0x25   :  { %153 = vmatpush.msra.mxu2 %v126_v36 }
  0x26   :  { %116 = vmatpush.msra.mxu1 %v81_v24 }
  0x27   :  { %154 = vmatpush.msra.mxu2 %v125_v37 }
  0x29   :  { %155 = vmatpush.msra.mxu2 %v124_v42 }
  0x2b   :  { %156 = vmatpush.msra.mxu2 %v123_v43 }
  0x2d   :  { %157 = vmatpush.msra.mxu2 %v122_v44 }
  0x93   :  { %v77_v39 = vpop.f32.mrf.mxu0 }
  0x94   :  { %v78_v40 = vadd.f32 %v186_v38, %v77_v39 }
  0x96   :  { %v80_v41 = vmax.f32 %v78_v40, 0.0 }
  0x98   :  { %117 = vmatmul.f32.vlgmr.msra.gmra.mxu1 %v80_v41 }
 0x115   :  { %v118_v46 = vpop.f32.mrf.mxu1 }
 0x116   :  { %v119_v47 = vadd.f32 %v187_v45, %v118_v46 }
 0x118   :  { %v121_v48 = vmax.f32 %v119_v47, 0.0 }
 0x11a   :  { %158 = vmatmul.f32.vlgmr.msra.gmra.mxu2 %v121_v48 }
 0x19d   :  { %v159_v50 = vpop.f32.mrf.mxu2 }
 0x19e   :  { %v160_v51 = vadd.f32 %v188_v49, %v159_v50 }
 0x1a0   :  { %163 = vst.msk [vmem:[#allocation5] sm:$0xff] %vm162_vm1, %v160_v51 }
 0x1a1   :  { %174 = dma.vmem_to_hbm [thread:$0]  %s170_s27, 128, %s172_s29, [#allocation4]  }
 0x1a2   :  { %239 = dma.done.wait [#allocation4], 128  }
 0x1a3   :  { %240 = vsyncadd [#allocation4], 4294967168 }
 0x1a4   :  { %179 = vsyncpa [#allocation3], 1 }
 0x1a5   :  { %180 = vsyncpa [#allocation4], 1 }

</bundles_post_ra>
